<compile_context>
chip_gen: v6e
topology: v6e:2x2x1
jax: 0.10.0
libtpu: 0.0.40
codegen_flags: <defaults>
</compile_context>

<pallas_src>
import functools

import jax
import jax.numpy as jnp
from jax.experimental import pallas as pl
from jax.experimental.pallas import tpu as pltpu

SUBLANE = 8
LANE = 128


def _round_up(x, m):
    return ((x + m - 1) // m) * m


def _nbytes(a):
    return a.size * a.dtype.itemsize


# ----------------------------- fused Pallas kernel -----------------------------

def _videornn_kernel(x_ref, w_ref, b_ref, wfc_ref, bfc_ref, out_ref, h_scr,
                     *, hidden_dim, gate_stride):
    """Whole forward in one invocation (seq_len == 1, zero initial LSTM state).

    x_ref   : (B, F)          raw input, un-padded (padded in-kernel)
    w_ref   : (L, W_pad, GW)  per-layer pruned W_ih^T, gate-compacted (i, g, o), bf16
    b_ref   : (L, 1, GW)      fused b_ih + b_hh (forget gate removed), f32
    wfc_ref : (H_fc, O_pad)   FC weight^T, zero-padded, bf16
    bfc_ref : (1, O_pad)      FC bias, zero-padded, f32
    out_ref : (B_pad, O_pad)  padded output (lane-dense unmasked store)
    h_scr   : (B_pad, W_pad)  f32 VMEM scratch carrying the hidden state
    """
    B, F = x_ref.shape
    L = w_ref.shape[0]
    H = hidden_dim
    gs = gate_stride

    # In-kernel zero-padding of the input into the hidden-state scratch.
    h_scr[...] = jnp.zeros_like(h_scr)
    h_scr[:B, :F] = x_ref[...].astype(h_scr.dtype)

    # Statically unrolled layer loop; all weights are already VMEM-resident.
    for l in range(L):
        h_in = h_scr[...].astype(w_ref.dtype)                  # bf16 MXU operand
        gates = jnp.dot(h_in, w_ref[l],
                        preferred_element_type=jnp.float32) + b_ref[l]
        # Compact gate layout: i at [0:H], g at [gs:gs+H], o at [2gs:2gs+H].
        i_g = jax.nn.sigmoid(gates[:, 0 * gs:0 * gs + H])
        g_g = jnp.tanh(gates[:, 1 * gs:1 * gs + H])
        o_g = jax.nn.sigmoid(gates[:, 2 * gs:2 * gs + H])
        h_new = o_g * jnp.tanh(i_g * g_g)                      # f * c0 == 0 dropped
        # Columns >= H of h_scr only ever meet zero weight rows in later layers.
        h_scr[:, 0:H] = h_new

    h_fc = h_scr[:, 0:wfc_ref.shape[0]].astype(wfc_ref.dtype)
    out_ref[...] = (jnp.dot(h_fc, wfc_ref[...],
                            preferred_element_type=jnp.float32)
                    + bfc_ref[...]).astype(out_ref.dtype)


# ------------------------------ parameter handling ------------------------------

def init_params(key, input_dim, hidden_dim, num_layers, output_dim):
    """PyTorch-shaped LSTM/Linear parameters (deterministic)."""
    params = {"lstm": [], "fc": None}
    k = 1.0 / jnp.sqrt(hidden_dim)
    keys = jax.random.split(key, num_layers * 4 + 2)
    for l in range(num_layers):
        din = input_dim if l == 0 else hidden_dim
        w_ih = jax.random.uniform(keys[4 * l + 0], (4 * hidden_dim, din),
                                  minval=-k, maxval=k, dtype=jnp.float32)
        w_hh = jax.random.uniform(keys[4 * l + 1], (4 * hidden_dim, hidden_dim),
                                  minval=-k, maxval=k, dtype=jnp.float32)
        b_ih = jax.random.uniform(keys[4 * l + 2], (4 * hidden_dim,),
                                  minval=-k, maxval=k, dtype=jnp.float32)
        b_hh = jax.random.uniform(keys[4 * l + 3], (4 * hidden_dim,),
                                  minval=-k, maxval=k, dtype=jnp.float32)
        params["lstm"].append((w_ih, w_hh, b_ih, b_hh))
    w_fc = jax.random.uniform(keys[-2], (output_dim, hidden_dim),
                              minval=-k, maxval=k, dtype=jnp.float32)
    b_fc = jax.random.uniform(keys[-1], (output_dim,),
                              minval=-k, maxval=k, dtype=jnp.float32)
    params["fc"] = (w_fc, b_fc)
    return params


def prepare_params(raw, input_dim, hidden_dim, output_dim):
    """One-time prep: transpose, prune forget gate, fuse biases, compact gates,
    de-pad K to 8, cast weights to bf16."""
    H = hidden_dim
    L = len(raw["lstm"])

    # Gate compaction: pack (i, g, o) into one 128-lane block when it fits.
    if 3 * H <= LANE:
        gs = H
        GW = LANE
    else:
        gs = _round_up(H, LANE)
        GW = 3 * gs

    W_pad = max(_round_up(input_dim, SUBLANE), _round_up(H, SUBLANE))  # K dim: 8-aligned only
    H_fc = _round_up(H, SUBLANE)
    O_pad = _round_up(output_dim, LANE)

    w_all = jnp.zeros((L, W_pad, GW), jnp.float32)
    b_all = jnp.zeros((L, 1, GW), jnp.float32)
    # PyTorch gate order along W_ih rows is (i, f, g, o); keep i, g, o only.
    keep = (0, 2, 3)
    for l, (w_ih, w_hh, b_ih, b_hh) in enumerate(raw["lstm"]):
        din = w_ih.shape[1]
        bias = b_ih + b_hh
        for k, g in enumerate(keep):
            blk = jnp.transpose(w_ih[g * H:(g + 1) * H, :])            # (din, H)
            w_all = w_all.at[l, :din, k * gs:k * gs + H].set(blk)
            b_all = b_all.at[l, 0, k * gs:k * gs + H].set(bias[g * H:(g + 1) * H])

    w_fc, b_fc = raw["fc"]
    O = w_fc.shape[0]
    wfc = jnp.zeros((H_fc, O_pad), jnp.float32).at[:H, :O].set(jnp.transpose(w_fc))
    bfc = jnp.zeros((1, O_pad), jnp.float32).at[0, :O].set(b_fc)

    return {
        "w_all": w_all.astype(jnp.bfloat16),   # bf16 weights: half the DMA bytes
        "b_all": b_all,                        # f32 (added to f32 accumulator)
        "wfc": wfc.astype(jnp.bfloat16),
        "bfc": bfc,
        "hidden_dim": H,
        "gate_stride": gs,
        "output_dim": output_dim,
    }


# ------------------------------ forward (one pallas_call, no grid) ------------------------------

def video_rnn_forward(x, prep):
    H = prep["hidden_dim"]
    gs = prep["gate_stride"]
    output_dim = prep["output_dim"]
    L, W_pad, GW = prep["w_all"].shape
    H_fc, O_pad = prep["wfc"].shape
    B = x.shape[0]
    B_pad = _round_up(max(B, SUBLANE), SUBLANE)

    kernel = functools.partial(_videornn_kernel, hidden_dim=H, gate_stride=gs)

    cost = pl.CostEstimate(
        flops=2 * L * B_pad * W_pad * GW + 2 * B_pad * H_fc * O_pad,
        transcendentals=4 * L * B_pad * H,
        bytes_accessed=(_nbytes(x) + _nbytes(prep["w_all"]) + _nbytes(prep["b_all"])
                        + _nbytes(prep["wfc"]) + _nbytes(prep["bfc"])
                        + 4 * B_pad * O_pad),
    )

    vmem = pl.BlockSpec(memory_space=pltpu.MemorySpace.VMEM)
    out_pad = pl.pallas_call(
        kernel,
        out_shape=jax.ShapeDtypeStruct((B_pad, O_pad), jnp.float32),
        in_specs=[vmem, vmem, vmem, vmem, vmem],
        out_specs=vmem,
        scratch_shapes=[pltpu.VMEM((B_pad, W_pad), jnp.float32)],  # hidden state
        cost_estimate=cost,
    )(x.astype(jnp.float32), prep["w_all"], prep["b_all"], prep["wfc"], prep["bfc"])

    return out_pad[:B, :output_dim]


# --------------------------------- main ------------------------------------

if __name__ == "__main__":
    batch = 2
    input_dim = 16     # == `feature` of the input
    hidden_dim = 32
    num_layers = 2
    output_dim = 8

    key = jax.random.PRNGKey(0)
    kx, kp = jax.random.split(key)
    x = jax.random.normal(kx, (batch, input_dim), dtype=jnp.float32)

    raw_params = init_params(kp, input_dim, hidden_dim, num_layers, output_dim)
    prep = prepare_params(raw_params, input_dim, hidden_dim, output_dim)

    out = video_rnn_forward(x, prep)
    out = jax.block_until_ready(out)
    assert out.shape == (batch, output_dim)
    print("KERNEL_OK")
</pallas_src>

<mosaic_0001>
module attributes {stable_mosaic.version = 11 : i64} {
  func.func @_videornn_kernel(%arg0: memref<2x16xf32, #tpu.memory_space<vmem>>, %arg1: memref<2x32x128xbf16, #tpu.memory_space<vmem>>, %arg2: memref<2x1x128xf32, #tpu.memory_space<vmem>>, %arg3: memref<32x128xbf16, #tpu.memory_space<vmem>>, %arg4: memref<1x128xf32, #tpu.memory_space<vmem>>, %arg5: memref<8x128xf32, #tpu.memory_space<vmem>>, %arg6: memref<8x32xf32, #tpu.memory_space<vmem>>) attributes {dimension_semantics = [], scalar_prefetch = 0 : i64, scratch_operands = 1 : i64, tpu.core_type = #tpu.core_type<tc>} {
    %cst = arith.constant 0.000000e+00 : f32
    %0 = vector.broadcast %cst : f32 to vector<8x32xf32>
    %c0 = arith.constant 0 : index
    %c0_0 = arith.constant 0 : index
    %1 = vector.load %arg6[%c0, %c0_0] : memref<8x32xf32, #tpu.memory_space<vmem>>, vector<8x32xf32>
    tpu.vector_store %arg6[%c0, %c0_0], %0 {strides = array<i32>} : memref<8x32xf32, #tpu.memory_space<vmem>>, vector<8x32xf32>,
    %c0_1 = arith.constant 0 : index
    %c0_2 = arith.constant 0 : index
    %2 = vector.load %arg0[%c0_1, %c0_2] : memref<2x16xf32, #tpu.memory_space<vmem>>, vector<2x16xf32>
    %c0_3 = arith.constant 0 : index
    %c0_4 = arith.constant 0 : index
    %3 = vector.load %arg6[%c0_3, %c0_4] : memref<8x32xf32, #tpu.memory_space<vmem>>, vector<2x16xf32>
    tpu.vector_store %arg6[%c0_3, %c0_4], %2 {strides = array<i32>} : memref<8x32xf32, #tpu.memory_space<vmem>>, vector<2x16xf32>,
    %c0_5 = arith.constant 0 : index
    %c0_6 = arith.constant 0 : index
    %4 = vector.load %arg6[%c0_5, %c0_6] : memref<8x32xf32, #tpu.memory_space<vmem>>, vector<8x32xf32>
    %5 = arith.truncf %4 : vector<8x32xf32> to vector<8x32xbf16>
    %c0_7 = arith.constant 0 : index
    %c0_8 = arith.constant 0 : index
    %c0_9 = arith.constant 0 : index
    %6 = vector.load %arg1[%c0_7, %c0_8, %c0_9] : memref<2x32x128xbf16, #tpu.memory_space<vmem>>, vector<1x32x128xbf16>
    %7 = vector.shape_cast %6 : vector<1x32x128xbf16> to vector<32x128xbf16>
    %cst_10 = arith.constant dense<0.000000e+00> : vector<8x128xf32>
    %8 = tpu.matmul %5, %7, %cst_10 {dimension_numbers = #tpu.dot_dimension_numbers<[1], [0], [0], [1], [0, 0, 1, 1], [], []>} : vector<8x32xbf16>, vector<32x128xbf16>, vector<8x128xf32> -> vector<8x128xf32>
    %c0_11 = arith.constant 0 : index
    %c0_12 = arith.constant 0 : index
    %c0_13 = arith.constant 0 : index
    %9 = vector.load %arg2[%c0_11, %c0_12, %c0_13] : memref<2x1x128xf32, #tpu.memory_space<vmem>>, vector<1x1x128xf32>
    %10 = vector.shape_cast %9 : vector<1x1x128xf32> to vector<1x128xf32>
    %11 = vector.broadcast %10 : vector<1x128xf32> to vector<8x128xf32>
    %12 = arith.addf %8, %11 : vector<8x128xf32>
    %13 = vector.extract_strided_slice %12 {offsets = [0, 0], sizes = [8, 32], strides = [1, 1]} : vector<8x128xf32> to vector<8x32xf32>
    %14 = arith.negf %13 : vector<8x32xf32>
    %15 = math.exp %14 : vector<8x32xf32>
    %cst_14 = arith.constant 1.000000e+00 : f32
    %16 = vector.broadcast %cst_14 : f32 to vector<8x32xf32>
    %17 = arith.addf %16, %15 : vector<8x32xf32>
    %18 = arith.divf %16, %17 : vector<8x32xf32>
    %19 = vector.extract_strided_slice %12 {offsets = [0, 32], sizes = [8, 32], strides = [1, 1]} : vector<8x128xf32> to vector<8x32xf32>
    %20 = math.tanh %19 : vector<8x32xf32>
    %21 = vector.extract_strided_slice %12 {offsets = [0, 64], sizes = [8, 32], strides = [1, 1]} : vector<8x128xf32> to vector<8x32xf32>
    %22 = arith.negf %21 : vector<8x32xf32>
    %23 = math.exp %22 : vector<8x32xf32>
    %cst_15 = arith.constant 1.000000e+00 : f32
    %24 = vector.broadcast %cst_15 : f32 to vector<8x32xf32>
    %25 = arith.addf %24, %23 : vector<8x32xf32>
    %26 = arith.divf %24, %25 : vector<8x32xf32>
    %27 = arith.mulf %18, %20 : vector<8x32xf32>
    %28 = math.tanh %27 : vector<8x32xf32>
    %29 = arith.mulf %26, %28 : vector<8x32xf32>
    %c0_16 = arith.constant 0 : index
    %c0_17 = arith.constant 0 : index
    %30 = vector.load %arg6[%c0_16, %c0_17] : memref<8x32xf32, #tpu.memory_space<vmem>>, vector<8x32xf32>
    tpu.vector_store %arg6[%c0_16, %c0_17], %29 {strides = array<i32>} : memref<8x32xf32, #tpu.memory_space<vmem>>, vector<8x32xf32>,
    %c0_18 = arith.constant 0 : index
    %c0_19 = arith.constant 0 : index
    %31 = vector.load %arg6[%c0_18, %c0_19] : memref<8x32xf32, #tpu.memory_space<vmem>>, vector<8x32xf32>
    %32 = arith.truncf %31 : vector<8x32xf32> to vector<8x32xbf16>
    %c1 = arith.constant 1 : index
    %c0_20 = arith.constant 0 : index
    %c0_21 = arith.constant 0 : index
    %33 = vector.load %arg1[%c1, %c0_20, %c0_21] : memref<2x32x128xbf16, #tpu.memory_space<vmem>>, vector<1x32x128xbf16>
    %34 = vector.shape_cast %33 : vector<1x32x128xbf16> to vector<32x128xbf16>
    %cst_22 = arith.constant dense<0.000000e+00> : vector<8x128xf32>
    %35 = tpu.matmul %32, %34, %cst_22 {dimension_numbers = #tpu.dot_dimension_numbers<[1], [0], [0], [1], [0, 0, 1, 1], [], []>} : vector<8x32xbf16>, vector<32x128xbf16>, vector<8x128xf32> -> vector<8x128xf32>
    %c1_23 = arith.constant 1 : index
    %c0_24 = arith.constant 0 : index
    %c0_25 = arith.constant 0 : index
    %36 = vector.load %arg2[%c1_23, %c0_24, %c0_25] : memref<2x1x128xf32, #tpu.memory_space<vmem>>, vector<1x1x128xf32>
    %37 = vector.shape_cast %36 : vector<1x1x128xf32> to vector<1x128xf32>
    %38 = vector.broadcast %37 : vector<1x128xf32> to vector<8x128xf32>
    %39 = arith.addf %35, %38 : vector<8x128xf32>
    %40 = vector.extract_strided_slice %39 {offsets = [0, 0], sizes = [8, 32], strides = [1, 1]} : vector<8x128xf32> to vector<8x32xf32>
    %41 = arith.negf %40 : vector<8x32xf32>
    %42 = math.exp %41 : vector<8x32xf32>
    %cst_26 = arith.constant 1.000000e+00 : f32
    %43 = vector.broadcast %cst_26 : f32 to vector<8x32xf32>
    %44 = arith.addf %43, %42 : vector<8x32xf32>
    %45 = arith.divf %43, %44 : vector<8x32xf32>
    %46 = vector.extract_strided_slice %39 {offsets = [0, 32], sizes = [8, 32], strides = [1, 1]} : vector<8x128xf32> to vector<8x32xf32>
    %47 = math.tanh %46 : vector<8x32xf32>
    %48 = vector.extract_strided_slice %39 {offsets = [0, 64], sizes = [8, 32], strides = [1, 1]} : vector<8x128xf32> to vector<8x32xf32>
    %49 = arith.negf %48 : vector<8x32xf32>
    %50 = math.exp %49 : vector<8x32xf32>
    %cst_27 = arith.constant 1.000000e+00 : f32
    %51 = vector.broadcast %cst_27 : f32 to vector<8x32xf32>
    %52 = arith.addf %51, %50 : vector<8x32xf32>
    %53 = arith.divf %51, %52 : vector<8x32xf32>
    %54 = arith.mulf %45, %47 : vector<8x32xf32>
    %55 = math.tanh %54 : vector<8x32xf32>
    %56 = arith.mulf %53, %55 : vector<8x32xf32>
    %c0_28 = arith.constant 0 : index
    %c0_29 = arith.constant 0 : index
    %57 = vector.load %arg6[%c0_28, %c0_29] : memref<8x32xf32, #tpu.memory_space<vmem>>, vector<8x32xf32>
    tpu.vector_store %arg6[%c0_28, %c0_29], %56 {strides = array<i32>} : memref<8x32xf32, #tpu.memory_space<vmem>>, vector<8x32xf32>,
    %c0_30 = arith.constant 0 : index
    %c0_31 = arith.constant 0 : index
    %58 = vector.load %arg6[%c0_30, %c0_31] : memref<8x32xf32, #tpu.memory_space<vmem>>, vector<8x32xf32>
    %59 = arith.truncf %58 : vector<8x32xf32> to vector<8x32xbf16>
    %c0_32 = arith.constant 0 : index
    %c0_33 = arith.constant 0 : index
    %60 = vector.load %arg3[%c0_32, %c0_33] : memref<32x128xbf16, #tpu.memory_space<vmem>>, vector<32x128xbf16>
    %cst_34 = arith.constant dense<0.000000e+00> : vector<8x128xf32>
    %61 = tpu.matmul %59, %60, %cst_34 {dimension_numbers = #tpu.dot_dimension_numbers<[1], [0], [0], [1], [0, 0, 1, 1], [], []>} : vector<8x32xbf16>, vector<32x128xbf16>, vector<8x128xf32> -> vector<8x128xf32>
    %c0_35 = arith.constant 0 : index
    %c0_36 = arith.constant 0 : index
    %62 = vector.load %arg4[%c0_35, %c0_36] : memref<1x128xf32, #tpu.memory_space<vmem>>, vector<1x128xf32>
    %63 = vector.broadcast %62 : vector<1x128xf32> to vector<8x128xf32>
    %64 = arith.addf %61, %63 : vector<8x128xf32>
    %c0_37 = arith.constant 0 : index
    %c0_38 = arith.constant 0 : index
    %65 = vector.load %arg5[%c0_37, %c0_38] : memref<8x128xf32, #tpu.memory_space<vmem>>, vector<8x128xf32>
    tpu.vector_store %arg5[%c0_37, %c0_38], %64 {strides = array<i32>} : memref<8x128xf32, #tpu.memory_space<vmem>>, vector<8x128xf32>,
    return
  }
}

</mosaic_0001>

<bundles_post_ra>
// kernel: tpu_custom_call.1
= control target key start
LH: loop header
LB: loop body
LE: loop exit
PB: predicated region body
PF: predicated region fallthrough
CT: control target
= control target key end

     0   :  { %10 = vsyncpa [#allocation4], 0  ;;  %s589_s0 = inlined_call_operand.hbm [shape: f32[2,16], index: 0, kind: input, shape index: {}]   ;;  %s590_s1 = inlined_call_operand.hbm [shape: bf16[2,32,128], index: 1, kind: input, shape index: {}]   ;;  %s591_s2 = inlined_call_operand.vmem [shape: f32[2,1,128], index: 2, kind: input, shape index: {}]   ;;  %s592_s3 = inlined_call_operand.hbm [shape: bf16[32,128], index: 3, kind: input, shape index: {}]   ;;  %s593_s4 = inlined_call_operand.vmem [shape: f32[1,128], index: 4, kind: input, shape index: {}]   ;;  %s594_s5 = inlined_call_operand.hbm [shape: f32[8,128], index: 5, kind: output, shape index: {}]  }
   0x1   :  { %11 = vsyncpa [#allocation7], 0 }
   0x2   :  { %12 = vsyncpa [#allocation5], 0  ;;  %s500_s18 = smov [#allocation6]  }
   0x3   :  { %s28_s19 = sshll.u32 %s500_s18, 4  ;;  %s29_s19 = int_to_ptr.vmem [resolvable:$true] %s28_s19 }
   0x4   :  { %s422_s20 = scalar_lea.vmem %s29_s19, 512  ;;  %p427_p1 = scmp.lt.s32.totalorder %s29_s19, %s29_s19 }
   0x5   :  { %p423_p0 = scmp.ne.s32.totalorder %s29_s19, %s422_s20  ;;  %p428_p2 = scmp.lt.s32.totalorder %s422_s20, %s422_s20 }
   0x7   :  { %p429_p3 = por %p428_p2, %p427_p1 }
   0x9   :  { %p430_p4 = pnand %p429_p3, %p423_p0 }
   0xb   :  { %433 = shalt.err (!%p430_p4)
}
   0xc   :  { %s501_s21 = smov 64   ;;  %s502_s22 = smov 4  }
   0xd   :  { %34 = dma.hbm_to_vmem [thread:$0]  %s590_s1, 512, %s29_s19, [#allocation7], %s501_s21, %s501_s21, %s502_s22  }
   0xe   :  { %s503_s25 = smov [#allocation3]   ;;  %s504_s27 = smov [#allocation8]  }
   0xf   :  { %s19_s26 = sshll.u32 %s503_s25, 4  ;;  %s42_s28 = sshll.u32 %s504_s27, 4  ;;  %s20_s26 = int_to_ptr.vmem [resolvable:$true] %s19_s26  ;;  %s43_s28 = int_to_ptr.vmem [resolvable:$true] %s42_s28 }
  0x10   :  { %s442_s29 = scalar_lea.vmem %s20_s26, 32  ;;  %p447_p6 = scmp.lt.s32.totalorder %s20_s26, %s20_s26 }
  0x11   :  { %p443_p5 = scmp.ne.s32.totalorder %s20_s26, %s442_s29  ;;  %p448_p7 = scmp.lt.s32.totalorder %s442_s29, %s442_s29 }
  0x13   :  { %p449_p8 = por %p448_p7, %p447_p6 }
  0x15   :  { %p450_p9 = pnand %p449_p8, %p443_p5 }
  0x17   :  { %453 = shalt.err (!%p450_p9)
}
  0x18   :  { %22 = dma.hbm_to_vmem [thread:$0]  %s589_s0, 32, %s20_s26, [#allocation4]  }
  0x19   :  { %s462_s7 = scalar_lea.vmem %s43_s28, 256  ;;  %p467_p11 = scmp.lt.s32.totalorder %s43_s28, %s43_s28 }
  0x1a   :  { %p463_p10 = scmp.ne.s32.totalorder %s43_s28, %s462_s7  ;;  %p468_p12 = scmp.lt.s32.totalorder %s462_s7, %s462_s7 }
  0x1c   :  { %p469_p13 = por %p468_p12, %p467_p11 }
  0x1e   :  { %p470_p0 = pnand %p469_p13, %p463_p10 }
  0x20   :  { %473 = shalt.err (!%p470_p0)
}
  0x21   :  { %48 = dma.hbm_to_vmem [thread:$0]  %s592_s3, 256, %s43_s28, [#allocation7], %s501_s21, %s501_s21, %s502_s22  }
  0x22   :  { %494 = dma.done.wait [#allocation4], 32  }
  0x23   :  { %495 = vsyncadd [#allocation4], 4294967264 }
  0x24   :  { %496 = dma.done.wait [#allocation7], 768  }
  0x25   :  { %497 = vsyncadd [#allocation7], 4294966528  ;;  %vm61_vm0 = vcmask 261120   ;;  %v505_v0 = vmov 0.0   ;;  %vm506_vm1 = vmmov 0   ;;  %v392_v1 = vld [vmem:[#allocation6 + $0x8] sm:$0xff]  }
  0x26   :  { %359 = vmatprep.subr.bf16.mxu0 %v505_v0  ;;  %363 = vmatprep.mubr.msk.bf16.mxu0 %vm506_vm1, %v505_v0  ;;  %62 = vst.msk [vmem:[#allocation2] sm:$0xff] %vm61_vm0, %v505_v0  ;;  %vm64_vm2 = vcmask 123904   ;;  %v393_v2 = vld [vmem:[#allocation6] sm:$0xff]   ;;  %v63_v3 = vld [vmem:[#allocation3] sm:$0x3]  ;;  %s507_s9 = smov 96  }
  0x27   :  { %367 = vmatprep.subr.bf16.mxu1 %v505_v0  ;;  %371 = vmatprep.mubr.msk.bf16.mxu1 %vm506_vm1, %v505_v0  ;;  %65 = vst.msk [vmem:[#allocation2] sm:$0x3] %vm64_vm2, %v63_v3  ;;  %v335_v6 = vld [vmem:[%s591_s2] ss:$0 sm:$0xff]  ;;  %v394_v20 = vld [vmem:[#allocation6 + $0x18] sm:$0xff]   ;;  %v396_v41 = vld [vmem:[#allocation8 + $0x8] sm:$0xff]  }
  0x28   :  { %360 = vmatpush3.bf16.msra.mxu0 %v392_v1  ;;  %368 = vmatpush3.bf16.msra.mxu1 %v394_v20  ;;  %v395_v21 = vld [vmem:[#allocation6 + $0x10] sm:$0xff]   ;;  %v397_v42 = vld [vmem:[#allocation8] sm:$0xff]   ;;  %s508_s13 = smov [#allocation9]  }
  0x29   :  { %361 = vmatprep.subr.bf16.mxu0 %v505_v0  ;;  %369 = vmatprep.subr.bf16.mxu1 %v505_v0  ;;  %v341_v27 = vld [vmem:[%s591_s2 + $0x1] ss:$0 sm:$0xff]  ;;  %v346_v48 = vld [vmem:[%s593_s4] ss:$0 sm:$0xff]  ;;  %s325_s14 = sshll.u32 %s508_s13, 4  ;;  %s326_s14 = int_to_ptr.vmem [resolvable:$true] %s325_s14 }
  0x2a   :  { %s474_s15 = scalar_lea.vmem %s326_s14, 128  ;;  %p479_p2 = scmp.lt.s32.totalorder %s326_s14, %s326_s14 }
  0x2b   :  { %p475_p1 = scmp.ne.s32.totalorder %s326_s14, %s474_s15  ;;  %p480_p3 = scmp.lt.s32.totalorder %s474_s15, %s474_s15 }
  0x2c   :  { %362 = vmatpush3.bf16.msra.mxu0 %v393_v2  ;;  %370 = vmatpush3.bf16.msra.mxu1 %v395_v21 }
  0x2d   :  { %375 = vmatprep.subr.bf16.mxu0 %v505_v0  ;;  %p481_p4 = por %p480_p3, %p479_p2 }
  0x2e   :  { %v66_v4 = vld [vmem:[#allocation2] sm:$0xff] }
  0x2f   :  { %v67_v5 = vpack.c.bf16 %v66_v4, %v66_v4  ;;  %p482_p5 = pnand %p481_p4, %p475_p1 }
  0x31   :  { %364 = vmatmul.mubr.msk.bf16.vlgmr.msra.gmra.mxu0 %vm61_vm0, %v67_v5 }
  0x32   :  { %379 = vmatprep.mubr.msk.bf16.mxu0 %vm506_vm1, %v505_v0  ;;  %376 = vmatpush3.bf16.msra.mxu0 %v396_v41 }
  0x33   :  { %377 = vmatprep.subr.bf16.mxu0 %v505_v0 }
  0x36   :  { %378 = vmatpush3.bf16.msra.mxu0 %v397_v42 }
  0xf1   :  { %v128_v7 = vpop.f32.mrf.mxu0 }
  0xf2   :  { %v129_v8 = vadd.f32 %v335_v6, %v128_v7 }
  0xf3   :  { %v365_v9 = vpop.f32.mrf.mxu0 }
  0xf4   :  { %398 = vtanh.f32 %v129_v8  ;;  %v339_v13 = vmul.f32 -1.442695, %v129_v8 }
  0xf5   :  { %v131_v10 = vpop.f32.mrf.mxu0 }
  0xf6   :  { %400 = vpow2.f32 %v339_v13 }
  0xf7   :  { %v366_v11 = vpop.f32.mrf.mxu0 }
 0x101   :  { %v399_v12 = vpop.eup %398 }
 0x102   :  { %142 = vrot.lane.b32.xlu0 %v399_v12, %s507_s9 }
 0x103   :  { %v401_v14 = vpop.eup %400 }
 0x104   :  { %v137_v15 = vadd.f32 1.0, %v401_v14 }
 0x106   :  { %402 = vrcp.f32 %v137_v15 }
 0x113   :  { %v403_v16 = vpop.eup %402 }
 0x174   :  { %v143_v17 = vpop.permute.xlu0 %142 }
 0x175   :  { %v145_v18 = vmul.f32 %v403_v16, %v143_v17 }
 0x177   :  { %404 = vtanh.f32 %v145_v18 }
 0x184   :  { %v405_v19 = vpop.eup %404 }
 0x185   :  { %148 = vrot.lane.b32.xlu0 %v405_v19, %s501_s21 }
 0x1f7   :  { %v149_v22 = vpop.permute.xlu0 %148 }
 0x1f8   :  { %v151_v23 = vmul.f32 %v403_v16, %v149_v22 }
 0x1fa   :  { %153 = vrot.lane.b32.xlu1 %v151_v23, %s501_s21 }
 0x26c   :  { %v154_v24 = vpop.permute.xlu1 %153 }
 0x26d   :  { %156 = vst.msk [vmem:[#allocation2] sm:$0xff] %vm61_vm0, %v154_v24 }
 0x274   :  { %v157_v25 = vld [vmem:[#allocation2] sm:$0xff] }
 0x275   :  { %v158_v26 = vpack.c.bf16 %v157_v25, %v157_v25 }
 0x277   :  { %372 = vmatmul.mubr.msk.bf16.vlgmr.msra.gmra.mxu1 %vm61_vm0, %v158_v26 }
 0x337   :  { %v221_v28 = vpop.f32.mrf.mxu1 }
 0x338   :  { %v222_v29 = vadd.f32 %v341_v27, %v221_v28 }
 0x339   :  { %v373_v30 = vpop.f32.mrf.mxu1 }
 0x33a   :  { %406 = vtanh.f32 %v222_v29  ;;  %v345_v34 = vmul.f32 -1.442695, %v222_v29 }
 0x33b   :  { %v224_v31 = vpop.f32.mrf.mxu1 }
 0x33c   :  { %408 = vpow2.f32 %v345_v34 }
 0x33d   :  { %v374_v32 = vpop.f32.mrf.mxu1 }
 0x347   :  { %v407_v33 = vpop.eup %406 }
 0x348   :  { %235 = vrot.lane.b32.xlu1 %v407_v33, %s507_s9 }
 0x349   :  { %v409_v35 = vpop.eup %408 }
 0x34a   :  { %v230_v36 = vadd.f32 1.0, %v409_v35 }
 0x34c   :  { %410 = vrcp.f32 %v230_v36 }
 0x359   :  { %v411_v37 = vpop.eup %410 }
 0x3ba   :  { %v236_v38 = vpop.permute.xlu1 %235 }
 0x3bb   :  { %v238_v39 = vmul.f32 %v411_v37, %v236_v38 }
 0x3bd   :  { %412 = vtanh.f32 %v238_v39 }
 0x3ca   :  { %v413_v40 = vpop.eup %412 }
 0x3cb   :  { %241 = vrot.lane.b32.xlu0 %v413_v40, %s501_s21 }
 0x43d   :  { %v242_v43 = vpop.permute.xlu0 %241 }
 0x43e   :  { %v244_v44 = vmul.f32 %v411_v37, %v242_v43 }
 0x440   :  { %246 = vrot.lane.b32.xlu1 %v244_v44, %s501_s21 }
 0x4b2   :  { %v247_v45 = vpop.permute.xlu1 %246 }
 0x4b3   :  { %249 = vst.msk [vmem:[#allocation2] sm:$0xff] %vm61_vm0, %v247_v45 }
 0x4ba   :  { %v250_v46 = vld [vmem:[#allocation2] sm:$0xff] }
 0x4bb   :  { %v251_v47 = vpack.c.bf16 %v250_v46, %v250_v46 }
 0x4bd   :  { %380 = vmatmul.mubr.msk.bf16.vlgmr.msra.gmra.mxu0 %vm61_vm0, %v251_v47 }
 0x57d   :  { %v312_v49 = vpop.f32.mrf.mxu0 }
 0x57e   :  { %v313_v50 = vadd.f32 %v346_v48, %v312_v49 }
 0x57f   :  { %v381_v51 = vpop.f32.mrf.mxu0 }
 0x580   :  { %318 = vst [vmem:[#allocation9] sm:$0xff] %v313_v50 }
 0x581   :  { %v315_v52 = vpop.f32.mrf.mxu0 }
 0x582   :  { %485 = shalt.err (!%p482_p5)
}
 0x583   :  { %328 = dma.vmem_to_hbm [thread:$0]  %s326_s14, 128, %s594_s5, [#allocation5]   ;;  %v382_v53 = vpop.f32.mrf.mxu0 }
 0x584   :  { %498 = dma.done.wait [#allocation5], 128  }
 0x585   :  { %499 = vsyncadd [#allocation5], 4294967168 }
 0x586   :  { %332 = vsyncpa [#allocation4], 1 }
 0x587   :  { %333 = vsyncpa [#allocation7], 1 }
 0x588   :  { %334 = vsyncpa [#allocation5], 1 }

</bundles_post_ra>
